<compile_context>
chip_gen: v6e
topology: v6e:2x2x1
jax: 0.10.0
libtpu: 0.0.40
codegen_flags: <defaults>
</compile_context>

<pallas_src>
import functools

import jax
import jax.numpy as jnp
from jax.experimental import pallas as pl
from jax.experimental.pallas import tpu as pltpu

BN_EPS = 1e-5
LANE = 128
SUBLANE = 8


def _round_up(x, m):
    return ((x + m - 1) // m) * m


def _pad_to(x, shape):
    return jnp.pad(x, [(0, t - s) for s, t in zip(x.shape, shape)])


# ----------------------------- fused Pallas kernel ------------------------------

def _fused_gcn_graph_kernel(a_ref, x0_ref, w_ref, scale_ref, shift_ref,
                            wlast_ref, poola_ref, blast_ref, o_ref, *, num_hidden):
    """Whole GCN_Graph eval forward in one kernel invocation.

    a_ref      [Np, Np]        bf16  symmetric-normalized dense adjacency (zero padded)
    x0_ref     [Np, Hp]        f32   AtomEncoder output (zero padded)
    w_ref      [L-1, Hp, Hp]   f32   stacked hidden GCNConv weights
    scale_ref  [L-1, 1, Hp]    f32   folded BN scale  (gamma * rsqrt(var + eps))
    shift_ref  [L-1, 1, Hp]    f32   folded BN shift + conv bias (b*scale + beta - mean*scale)
    wlast_ref  [Hp, Op]        f32   fused last-conv * graph-Linear weight (W_L @ lin_w)
    poola_ref  [Gp, Np]        f32   fused mean-pool @ A_hat matrix
    blast_ref  [1, Op]         f32   fused bias (b_L @ lin_w + lin_b)
    o_ref      [Gp, Op]        f32
    """
    a = a_ref[...]          # bf16, stays resident across all layers
    x = x0_ref[...]         # f32 activations

    # Unrolled hidden-layer loop (static): GCNConv + folded BN(+bias) + ReLU.
    for i in range(num_hidden):
        xw = jnp.dot(x, w_ref[i], preferred_element_type=jnp.float32)
        h = jnp.dot(a, xw.astype(jnp.bfloat16),
                    preferred_element_type=jnp.float32)
        x = jnp.maximum(h * scale_ref[i] + shift_ref[i], 0.0)   # dropout = identity (eval)

    # Fused (last GCNConv -> global_mean_pool -> Linear) epilogue:
    #   out = (P @ A_hat) @ (x @ (W_L @ lin_w)) + (b_L @ lin_w + lin_b)
    xw = jnp.dot(x, wlast_ref[...], preferred_element_type=jnp.float32)
    o_ref[...] = jnp.dot(poola_ref[...], xw,
                         preferred_element_type=jnp.float32) + blast_ref[...]


# ------------------------------- parameters --------------------------------

def init_params(key, num_atom_feats, vocab, hidden, out_dim, num_layers):
    ks = list(jax.random.split(key, 16))
    p = {}
    # AtomEncoder: one embedding table per categorical atom feature, outputs summed.
    p["atom_emb"] = 0.1 * jax.random.normal(
        ks[0], (num_atom_feats, vocab, hidden), jnp.float32)

    # GCNConv layers (input_dim = hidden_dim = output_dim = hidden for gnn_node).
    conv_w, conv_b = [], []
    for i in range(num_layers):
        lim = jnp.sqrt(6.0 / (hidden + hidden))       # glorot
        conv_w.append(jax.random.uniform(ks[1 + i], (hidden, hidden),
                                         jnp.float32, -lim, lim))
        conv_b.append(jnp.zeros((1, hidden), jnp.float32))
    p["conv_w"], p["conv_b"] = conv_w, conv_b

    # BatchNorm1d params / running stats (deterministic pseudo-random, var > 0).
    gm, bt, mu, vr = [], [], [], []
    for i in range(num_layers - 1):
        k = jax.random.fold_in(ks[10], i)
        k1, k2, k3, k4 = jax.random.split(k, 4)
        gm.append(1.0 + 0.1 * jax.random.normal(k1, (1, hidden), jnp.float32))
        bt.append(0.1 * jax.random.normal(k2, (1, hidden), jnp.float32))
        mu.append(0.1 * jax.random.normal(k3, (1, hidden), jnp.float32))
        vr.append(1.0 + 0.1 * jax.random.uniform(k4, (1, hidden), jnp.float32))
    p["bn_gamma"], p["bn_beta"], p["bn_mean"], p["bn_var"] = gm, bt, mu, vr

    # Final graph-level Linear(hidden -> out_dim); stored as [hidden, out_dim].
    lim = 1.0 / jnp.sqrt(hidden)
    p["lin_w"] = jax.random.uniform(ks[11], (hidden, out_dim), jnp.float32, -lim, lim)
    p["lin_b"] = jax.random.uniform(ks[12], (1, out_dim), jnp.float32, -lim, lim)
    return p


# ------------------------------- shared glue --------------------------------

def _atom_encoder(params, x_atoms):
    n, hidden = x_atoms.shape[0], params["atom_emb"].shape[-1]
    emb = jnp.zeros((n, hidden), jnp.float32)
    for f in range(x_atoms.shape[1]):
        emb = emb + params["atom_emb"][f][x_atoms[:, f]]
    return emb


def _normalized_adjacency(edge_index, n):
    # A_hat = D^-1/2 (A + I) D^-1/2  (GCN normalization, self-loops included)
    a = jnp.zeros((n, n), jnp.float32).at[edge_index[1], edge_index[0]].set(1.0)
    a = jnp.maximum(a, jnp.eye(n, dtype=jnp.float32))
    dinv = jax.lax.rsqrt(jnp.sum(a, axis=1))
    return a * dinv[:, None] * dinv[None, :]


def _mean_pool_matrix(batch, n, num_graphs):
    counts = jnp.zeros((num_graphs,), jnp.float32).at[batch].add(1.0)
    pool = (batch[None, :] == jnp.arange(num_graphs)[:, None]).astype(jnp.float32)
    return pool / jnp.maximum(counts, 1.0)[:, None]


# --------------------------------- forward ---------------------------------

def gcn_graph_forward(params, x_atoms, edge_index, batch, num_graphs):
    n = x_atoms.shape[0]
    hidden = params["atom_emb"].shape[-1]
    out_dim = params["lin_w"].shape[-1]
    num_layers = len(params["conv_w"])
    num_hidden = num_layers - 1
    assert num_layers >= 2, "GCN_Graph node model always has >= 2 GCNConv layers"

    # padded (lane/sublane-dense) shapes
    n_p = _round_up(n, LANE)            # lane dim of A_hat and pool matrix
    h_p = _round_up(hidden, LANE)
    o_p = _round_up(out_dim, LANE)
    g_p = _round_up(num_graphs, SUBLANE)

    # --- plain-JAX glue: embedding gather, dense A_hat, mean-pool matrix ---
    emb = _atom_encoder(params, x_atoms)
    a_hat = _normalized_adjacency(edge_index, n)
    pool_mat = _mean_pool_matrix(batch, n, num_graphs)

    # --- fold BatchNorm (eval running stats) + conv bias into scale/shift ---
    scales = [g * jax.lax.rsqrt(v + BN_EPS)
              for g, v in zip(params["bn_gamma"], params["bn_var"])]
    shifts = [cb * s + (b - m * s)
              for cb, s, b, m in zip(params["conv_b"][:num_hidden], scales,
                                     params["bn_beta"], params["bn_mean"])]

    # --- fuse last GCNConv + mean-pool + Linear (all linear, no nonlinearity) ---
    w_last = params["conv_w"][-1] @ params["lin_w"]          # [hidden, out_dim]
    b_last = params["conv_b"][-1] @ params["lin_w"] + params["lin_b"]   # [1, out_dim]
    pool_a = pool_mat @ a_hat                                # [num_graphs, n], f32

    # --- zero-pad everything to lane/sublane-dense slabs ---
    a_pad = _pad_to(a_hat, (n_p, n_p)).astype(jnp.bfloat16)
    x0_pad = _pad_to(emb, (n_p, h_p))
    w_pad = _pad_to(jnp.stack(params["conv_w"][:num_hidden]), (num_hidden, h_p, h_p))
    scale_pad = _pad_to(jnp.stack(scales), (num_hidden, 1, h_p))
    shift_pad = _pad_to(jnp.stack(shifts), (num_hidden, 1, h_p))
    wlast_pad = _pad_to(w_last, (h_p, o_p))
    poola_pad = _pad_to(pool_a, (g_p, n_p))
    blast_pad = _pad_to(b_last, (1, o_p))

    operands = (a_pad, x0_pad, w_pad, scale_pad, shift_pad,
                wlast_pad, poola_pad, blast_pad)

    flops = (num_hidden * (2 * n_p * h_p * h_p + 2 * n_p * n_p * h_p)
             + 2 * n_p * h_p * o_p + 2 * g_p * n_p * o_p)
    bytes_accessed = (sum(int(o.size) * o.dtype.itemsize for o in operands)
                      + g_p * o_p * 4)

    vmem_spec = pl.BlockSpec(memory_space=pltpu.MemorySpace.VMEM)
    kernel = functools.partial(_fused_gcn_graph_kernel, num_hidden=num_hidden)

    out_pad = pl.pallas_call(
        kernel,
        out_shape=jax.ShapeDtypeStruct((g_p, o_p), jnp.float32),
        in_specs=[vmem_spec] * len(operands),
        out_specs=vmem_spec,
        compiler_params=pltpu.CompilerParams(vmem_limit_bytes=32 * 1024 * 1024),
        cost_estimate=pl.CostEstimate(flops=int(flops), transcendentals=0,
                                      bytes_accessed=int(bytes_accessed)),
    )(*operands)

    # strip lane/sublane padding
    return out_pad[:num_graphs, :out_dim]


# ------------------------- pure-JAX f32 reference ---------------------------

def gcn_graph_reference(params, x_atoms, edge_index, batch, num_graphs):
    n = x_atoms.shape[0]
    num_layers = len(params["conv_w"])
    x = _atom_encoder(params, x_atoms)
    a_hat = _normalized_adjacency(edge_index, n)
    for i in range(num_layers):
        h = a_hat @ (x @ params["conv_w"][i]) + params["conv_b"][i]
        if i < num_layers - 1:
            h = ((h - params["bn_mean"][i])
                 * jax.lax.rsqrt(params["bn_var"][i] + BN_EPS)
                 * params["bn_gamma"][i] + params["bn_beta"][i])
            x = jnp.maximum(h, 0.0)
        else:
            x = h
    pool = _mean_pool_matrix(batch, n, num_graphs)
    return pool @ x @ params["lin_w"] + params["lin_b"]


# ----------------------------------- main -----------------------------------

if __name__ == "__main__":
    key = jax.random.PRNGKey(0)
    N_NODES, F_ATOM, VOCAB = 16, 4, 10
    HIDDEN, OUT_DIM, NUM_LAYERS, NUM_GRAPHS = 32, 8, 3, 2

    k_x, k_e, k_par = jax.random.split(key, 3)

    # Synthetic batched graph: integer atom features, undirected edge_index, batch vector.
    x_atoms = jax.random.randint(k_x, (N_NODES, F_ATOM), 0, VOCAB, dtype=jnp.int32)
    n_edges = 24
    src = jax.random.randint(k_e, (n_edges,), 0, N_NODES, dtype=jnp.int32)
    dst = jax.random.randint(jax.random.fold_in(k_e, 1), (n_edges,), 0, N_NODES,
                             dtype=jnp.int32)
    edge_index = jnp.concatenate(
        [jnp.stack([src, dst]), jnp.stack([dst, src])], axis=1)   # [2, 2*E], symmetric
    batch = jnp.array([0] * 9 + [1] * 7, dtype=jnp.int32)         # node -> graph id

    params = init_params(k_par, F_ATOM, VOCAB, HIDDEN, OUT_DIM, NUM_LAYERS)

    out = gcn_graph_forward(params, x_atoms, edge_index, batch, NUM_GRAPHS)
    out = jax.block_until_ready(out)

    assert out.shape == (NUM_GRAPHS, OUT_DIM)
    assert bool(jnp.all(jnp.isfinite(out)))

    # loose tolerance: kernel runs the adjacency matmuls in bf16 (f32 accumulation)
    ref = gcn_graph_reference(params, x_atoms, edge_index, batch, NUM_GRAPHS)
    max_err = float(jnp.max(jnp.abs(out - ref)))
    assert max_err < 5e-2, f"max abs error vs f32 reference: {max_err}"

    print("KERNEL_OK")
</pallas_src>

<mosaic_0001>
module attributes {stable_mosaic.version = 11 : i64} {
  func.func @_fused_gcn_graph_kernel(%arg0: memref<128x128xbf16, #tpu.memory_space<vmem>>, %arg1: memref<128x128xf32, #tpu.memory_space<vmem>>, %arg2: memref<2x128x128xf32, #tpu.memory_space<vmem>>, %arg3: memref<2x1x128xf32, #tpu.memory_space<vmem>>, %arg4: memref<2x1x128xf32, #tpu.memory_space<vmem>>, %arg5: memref<128x128xf32, #tpu.memory_space<vmem>>, %arg6: memref<8x128xf32, #tpu.memory_space<vmem>>, %arg7: memref<1x128xf32, #tpu.memory_space<vmem>>, %arg8: memref<8x128xf32, #tpu.memory_space<vmem>>) attributes {dimension_semantics = [], scalar_prefetch = 0 : i64, scratch_operands = 0 : i64, tpu.core_type = #tpu.core_type<tc>} {
    %c0 = arith.constant 0 : index
    %c0_0 = arith.constant 0 : index
    %0 = vector.load %arg0[%c0, %c0_0] : memref<128x128xbf16, #tpu.memory_space<vmem>>, vector<128x128xbf16>
    %c0_1 = arith.constant 0 : index
    %c0_2 = arith.constant 0 : index
    %1 = vector.load %arg1[%c0_1, %c0_2] : memref<128x128xf32, #tpu.memory_space<vmem>>, vector<128x128xf32>
    %c0_3 = arith.constant 0 : index
    %c0_4 = arith.constant 0 : index
    %c0_5 = arith.constant 0 : index
    %2 = vector.load %arg2[%c0_3, %c0_4, %c0_5] : memref<2x128x128xf32, #tpu.memory_space<vmem>>, vector<1x128x128xf32>
    %3 = vector.shape_cast %2 : vector<1x128x128xf32> to vector<128x128xf32>
    %cst = arith.constant dense<0.000000e+00> : vector<128x128xf32>
    %4 = tpu.matmul %1, %3, %cst {dimension_numbers = #tpu.dot_dimension_numbers<[1], [0], [0], [1], [0, 0, 1, 1], [], []>} : vector<128x128xf32>, vector<128x128xf32>, vector<128x128xf32> -> vector<128x128xf32>
    %5 = arith.truncf %4 : vector<128x128xf32> to vector<128x128xbf16>
    %cst_6 = arith.constant dense<0.000000e+00> : vector<128x128xf32>
    %6 = tpu.matmul %0, %5, %cst_6 {dimension_numbers = #tpu.dot_dimension_numbers<[1], [0], [0], [1], [0, 0, 1, 1], [], []>} : vector<128x128xbf16>, vector<128x128xbf16>, vector<128x128xf32> -> vector<128x128xf32>
    %c0_7 = arith.constant 0 : index
    %c0_8 = arith.constant 0 : index
    %c0_9 = arith.constant 0 : index
    %7 = vector.load %arg3[%c0_7, %c0_8, %c0_9] : memref<2x1x128xf32, #tpu.memory_space<vmem>>, vector<1x1x128xf32>
    %8 = vector.shape_cast %7 : vector<1x1x128xf32> to vector<1x128xf32>
    %9 = vector.broadcast %8 : vector<1x128xf32> to vector<128x128xf32>
    %10 = arith.mulf %6, %9 : vector<128x128xf32>
    %c0_10 = arith.constant 0 : index
    %c0_11 = arith.constant 0 : index
    %c0_12 = arith.constant 0 : index
    %11 = vector.load %arg4[%c0_10, %c0_11, %c0_12] : memref<2x1x128xf32, #tpu.memory_space<vmem>>, vector<1x1x128xf32>
    %12 = vector.shape_cast %11 : vector<1x1x128xf32> to vector<1x128xf32>
    %13 = vector.broadcast %12 : vector<1x128xf32> to vector<128x128xf32>
    %14 = arith.addf %10, %13 : vector<128x128xf32>
    %cst_13 = arith.constant 0.000000e+00 : f32
    %15 = vector.broadcast %cst_13 : f32 to vector<128x128xf32>
    %16 = arith.maximumf %14, %15 : vector<128x128xf32>
    %c1 = arith.constant 1 : index
    %c0_14 = arith.constant 0 : index
    %c0_15 = arith.constant 0 : index
    %17 = vector.load %arg2[%c1, %c0_14, %c0_15] : memref<2x128x128xf32, #tpu.memory_space<vmem>>, vector<1x128x128xf32>
    %18 = vector.shape_cast %17 : vector<1x128x128xf32> to vector<128x128xf32>
    %cst_16 = arith.constant dense<0.000000e+00> : vector<128x128xf32>
    %19 = tpu.matmul %16, %18, %cst_16 {dimension_numbers = #tpu.dot_dimension_numbers<[1], [0], [0], [1], [0, 0, 1, 1], [], []>} : vector<128x128xf32>, vector<128x128xf32>, vector<128x128xf32> -> vector<128x128xf32>
    %20 = arith.truncf %19 : vector<128x128xf32> to vector<128x128xbf16>
    %cst_17 = arith.constant dense<0.000000e+00> : vector<128x128xf32>
    %21 = tpu.matmul %0, %20, %cst_17 {dimension_numbers = #tpu.dot_dimension_numbers<[1], [0], [0], [1], [0, 0, 1, 1], [], []>} : vector<128x128xbf16>, vector<128x128xbf16>, vector<128x128xf32> -> vector<128x128xf32>
    %c1_18 = arith.constant 1 : index
    %c0_19 = arith.constant 0 : index
    %c0_20 = arith.constant 0 : index
    %22 = vector.load %arg3[%c1_18, %c0_19, %c0_20] : memref<2x1x128xf32, #tpu.memory_space<vmem>>, vector<1x1x128xf32>
    %23 = vector.shape_cast %22 : vector<1x1x128xf32> to vector<1x128xf32>
    %24 = vector.broadcast %23 : vector<1x128xf32> to vector<128x128xf32>
    %25 = arith.mulf %21, %24 : vector<128x128xf32>
    %c1_21 = arith.constant 1 : index
    %c0_22 = arith.constant 0 : index
    %c0_23 = arith.constant 0 : index
    %26 = vector.load %arg4[%c1_21, %c0_22, %c0_23] : memref<2x1x128xf32, #tpu.memory_space<vmem>>, vector<1x1x128xf32>
    %27 = vector.shape_cast %26 : vector<1x1x128xf32> to vector<1x128xf32>
    %28 = vector.broadcast %27 : vector<1x128xf32> to vector<128x128xf32>
    %29 = arith.addf %25, %28 : vector<128x128xf32>
    %cst_24 = arith.constant 0.000000e+00 : f32
    %30 = vector.broadcast %cst_24 : f32 to vector<128x128xf32>
    %31 = arith.maximumf %29, %30 : vector<128x128xf32>
    %c0_25 = arith.constant 0 : index
    %c0_26 = arith.constant 0 : index
    %32 = vector.load %arg5[%c0_25, %c0_26] : memref<128x128xf32, #tpu.memory_space<vmem>>, vector<128x128xf32>
    %cst_27 = arith.constant dense<0.000000e+00> : vector<128x128xf32>
    %33 = tpu.matmul %31, %32, %cst_27 {dimension_numbers = #tpu.dot_dimension_numbers<[1], [0], [0], [1], [0, 0, 1, 1], [], []>} : vector<128x128xf32>, vector<128x128xf32>, vector<128x128xf32> -> vector<128x128xf32>
    %c0_28 = arith.constant 0 : index
    %c0_29 = arith.constant 0 : index
    %34 = vector.load %arg6[%c0_28, %c0_29] : memref<8x128xf32, #tpu.memory_space<vmem>>, vector<8x128xf32>
    %cst_30 = arith.constant dense<0.000000e+00> : vector<8x128xf32>
    %35 = tpu.matmul %34, %33, %cst_30 {dimension_numbers = #tpu.dot_dimension_numbers<[1], [0], [0], [1], [0, 0, 1, 1], [], []>} : vector<8x128xf32>, vector<128x128xf32>, vector<8x128xf32> -> vector<8x128xf32>
    %c0_31 = arith.constant 0 : index
    %c0_32 = arith.constant 0 : index
    %36 = vector.load %arg7[%c0_31, %c0_32] : memref<1x128xf32, #tpu.memory_space<vmem>>, vector<1x128xf32>
    %37 = vector.broadcast %36 : vector<1x128xf32> to vector<8x128xf32>
    %38 = arith.addf %35, %37 : vector<8x128xf32>
    %c0_33 = arith.constant 0 : index
    %c0_34 = arith.constant 0 : index
    %39 = vector.load %arg8[%c0_33, %c0_34] : memref<8x128xf32, #tpu.memory_space<vmem>>, vector<8x128xf32>
    tpu.vector_store %arg8[%c0_33, %c0_34], %38 {strides = array<i32>} : memref<8x128xf32, #tpu.memory_space<vmem>>, vector<8x128xf32>,
    return
  }
}

</mosaic_0001>

<bundles_post_ra>
// kernel: tpu_custom_call.1
= control target key start
LH: loop header
LB: loop body
LE: loop exit
PB: predicated region body
PF: predicated region fallthrough
CT: control target
= control target key end

     0   :  { %13 = vsyncpa [#allocation3], 0  ;;  %s1873_s0 = inlined_call_operand.hbm [shape: bf16[128,128], index: 0, kind: input, shape index: {}]   ;;  %s1874_s1 = inlined_call_operand.hbm [shape: f32[128,128], index: 1, kind: input, shape index: {}]   ;;  %s1875_s2 = inlined_call_operand.hbm [shape: f32[2,128,128], index: 2, kind: input, shape index: {}]   ;;  %s1876_s3 = inlined_call_operand.vmem [shape: f32[2,1,128], index: 3, kind: input, shape index: {}]   ;;  %s1877_s4 = inlined_call_operand.hbm [shape: f32[2,1,128], index: 4, kind: input, shape index: {}]   ;;  %s1878_s5 = inlined_call_operand.hbm [shape: f32[128,128], index: 5, kind: input, shape index: {}]   ;;  %s1879_s6 = inlined_call_operand.vmem [shape: f32[8,128], index: 6, kind: input, shape index: {}]   ;;  %s1880_s7 = inlined_call_operand.vmem [shape: f32[1,128], index: 7, kind: input, shape index: {}]   ;;  %s1881_s8 = inlined_call_operand.hbm [shape: f32[8,128], index: 8, kind: output, shape index: {}]  }
   0x1   :  { %14 = vsyncpa [#allocation6], 0 }
   0x2   :  { %15 = vsyncpa [#allocation9], 0 }
   0x3   :  { %16 = vsyncpa [#allocation4], 0  ;;  %s1671_s27 = smov [#allocation5]  }
   0x4   :  { %s34_s28 = sshll.u32 %s1671_s27, 4  ;;  %s35_s28 = int_to_ptr.vmem [resolvable:$true] %s34_s28 }
   0x5   :  { %s1551_s29 = scalar_lea.vmem %s35_s28, 2048  ;;  %p1556_p1 = scmp.lt.s32.totalorder %s35_s28, %s35_s28 }
   0x6   :  { %p1552_p0 = scmp.ne.s32.totalorder %s35_s28, %s1551_s29  ;;  %p1557_p2 = scmp.lt.s32.totalorder %s1551_s29, %s1551_s29 }
   0x8   :  { %p1558_p3 = por %p1557_p2, %p1556_p1 }
   0xa   :  { %p1559_p4 = pnand %p1558_p3, %p1552_p0 }
   0xc   :  { %1562 = shalt.err (!%p1559_p4)
}
   0xd   :  { %s1672_s30 = smov 128   ;;  %s1673_s9 = smov 8  }
   0xe   :  { %40 = dma.hbm_to_vmem [thread:$0]  %s1874_s1, 2048, %s35_s28, [#allocation6], %s1672_s30, %s1672_s30, %s1673_s9  }
   0xf   :  { %s1674_s12 = smov [#allocation8]  }
  0x10   :  { %s60_s13 = sshll.u32 %s1674_s12, 4  ;;  %s61_s13 = int_to_ptr.vmem [resolvable:$true] %s60_s13 }
  0x11   :  { %s1571_s14 = scalar_lea.vmem %s61_s13, 32  ;;  %p1576_p6 = scmp.lt.s32.totalorder %s61_s13, %s61_s13 }
  0x12   :  { %p1572_p5 = scmp.ne.s32.totalorder %s61_s13, %s1571_s14  ;;  %p1577_p7 = scmp.lt.s32.totalorder %s1571_s14, %s1571_s14 }
  0x14   :  { %p1578_p8 = por %p1577_p7, %p1576_p6 }
  0x16   :  { %p1579_p9 = pnand %p1578_p8, %p1572_p5 }
  0x18   :  { %1582 = shalt.err (!%p1579_p9)
}
  0x19   :  { %s1675_s15 = smov 16   ;;  %s1676_s16 = smov 1  }
  0x1a   :  { %66 = dma.hbm_to_vmem [thread:$0]  %s1877_s4, 32, %s61_s13, [#allocation9], %s1675_s15, %s1675_s15, %s1676_s16  }
  0x1b   :  { %s1677_s19 = smov [#allocation2]  }
  0x1c   :  { %s22_s20 = sshll.u32 %s1677_s19, 4  ;;  %s23_s20 = int_to_ptr.vmem [resolvable:$true] %s22_s20 }
  0x1d   :  { %s1591_s1 = scalar_lea.vmem %s23_s20, 1024  ;;  %p1596_p11 = scmp.lt.s32.totalorder %s23_s20, %s23_s20 }
  0x1e   :  { %p1592_p10 = scmp.ne.s32.totalorder %s23_s20, %s1591_s1  ;;  %p1597_p12 = scmp.lt.s32.totalorder %s1591_s1, %s1591_s1 }
  0x20   :  { %p1598_p13 = por %p1597_p12, %p1596_p11 }
  0x22   :  { %p1599_p0 = pnand %p1598_p13, %p1592_p10 }
  0x24   :  { %1602 = shalt.err (!%p1599_p0)
}
  0x25   :  { %s1678_s21 = smov 64   ;;  %s1679_s22 = smov 4  }
  0x26   :  { %28 = dma.hbm_to_vmem [thread:$0]  %s1873_s0, 1024, %s23_s20, [#allocation3], %s1678_s21, %s1678_s21, %s1679_s22  }
  0x27   :  { %s1680_s25 = smov [#allocation7]   ;;  %s1681_s4 = smov [#allocation10]  }
  0x28   :  { %s46_s26 = sshll.u32 %s1680_s25, 4  ;;  %s72_s27 = sshll.u32 %s1681_s4, 4  ;;  %s47_s26 = int_to_ptr.vmem [resolvable:$true] %s46_s26  ;;  %s73_s27 = int_to_ptr.vmem [resolvable:$true] %s72_s27 }
  0x29   :  { %s1611_s28 = scalar_lea.vmem %s47_s26, 4096  ;;  %p1616_p2 = scmp.lt.s32.totalorder %s47_s26, %s47_s26 }
  0x2a   :  { %p1612_p1 = scmp.ne.s32.totalorder %s47_s26, %s1611_s28  ;;  %p1617_p3 = scmp.lt.s32.totalorder %s1611_s28, %s1611_s28 }
  0x2c   :  { %p1618_p4 = por %p1617_p3, %p1616_p2 }
  0x2e   :  { %p1619_p5 = pnand %p1618_p4, %p1612_p1 }
  0x30   :  { %1622 = shalt.err (!%p1619_p5)
}
  0x31   :  { %52 = dma.hbm_to_vmem [thread:$0]  %s1875_s2, 4096, %s47_s26, [#allocation6], %s1672_s30, %s1672_s30, %s1673_s9  }
  0x32   :  { %s1631_s0 = scalar_lea.vmem %s73_s27, 2048  ;;  %p1636_p7 = scmp.lt.s32.totalorder %s73_s27, %s73_s27 }
  0x33   :  { %p1632_p6 = scmp.ne.s32.totalorder %s73_s27, %s1631_s0  ;;  %p1637_p8 = scmp.lt.s32.totalorder %s1631_s0, %s1631_s0 }
  0x35   :  { %p1638_p9 = por %p1637_p8, %p1636_p7 }
  0x37   :  { %p1639_p10 = pnand %p1638_p9, %p1632_p6 }
  0x39   :  { %1642 = shalt.err (!%p1639_p10)
}
  0x3a   :  { %78 = dma.hbm_to_vmem [thread:$0]  %s1878_s5, 2048, %s73_s27, [#allocation9], %s1672_s30, %s1672_s30, %s1673_s9  }
  0x3b   :  { %1663 = dma.done.wait [#allocation3], 1024  }
  0x3c   :  { %1664 = vsyncadd [#allocation3], 4294966272 }
  0x3d   :  { %1665 = dma.done.wait [#allocation6], 6144  }
  0x3e   :  { %1666 = vsyncadd [#allocation6], 4294961152 }
  0x3f   :  { %1667 = dma.done.wait [#allocation9], 2080  }
  0x40   :  { %1668 = vsyncadd [#allocation9], 4294965216  ;;  %v146_v0 = vld [vmem:[#allocation7 + $0x78] sm:$0xff]  ;;  %v145_v1 = vld [vmem:[#allocation7 + $0x70] sm:$0xff]  ;;  %vm1683_vm0 = vmmov 0   ;;  %s1684_s16 = smov [#allocation11]  }
  0x41   :  { %1254 = vmatprep.subr.mxu0 %v146_v0  ;;  %v144_v2 = vld [vmem:[#allocation7 + $0x68] sm:$0xff]  ;;  %v143_v3 = vld [vmem:[#allocation7 + $0x60] sm:$0xff]  ;;  %v142_v5 = vld [vmem:[#allocation7 + $0x58] sm:$0xff]  ;;  %s1084_s17 = sshll.u32 %s1684_s16, 4  ;;  %s1085_s17 = int_to_ptr.vmem [resolvable:$true] %s1084_s17 }
  0x42   :  { %1255 = vmatpush3.msra.mxu0 %v146_v0  ;;  %v115_v4 = vld [vmem:[#allocation5] sm:$0xff]  ;;  %v141_v6 = vld [vmem:[#allocation7 + $0x50] sm:$0xff]  ;;  %v140_v7 = vld [vmem:[#allocation7 + $0x48] sm:$0xff]  ;;  %s1643_s18 = scalar_lea.vmem %s1085_s17, 128  ;;  %p1648_p12 = scmp.lt.s32.totalorder %s1085_s17, %s1085_s17 }
  0x43   :  { %1256 = vmatprep.subr.mxu0 %v145_v1  ;;  %1286 = vmatprep.mubr.f32.mxu0 %v115_v4  ;;  %v139_v8 = vld [vmem:[#allocation7 + $0x40] sm:$0xff]  ;;  %v138_v9 = vld [vmem:[#allocation7 + $0x38] sm:$0xff]  ;;  %v137_v10 = vld [vmem:[#allocation7 + $0x30] sm:$0xff]  ;;  %p1644_p11 = scmp.ne.s32.totalorder %s1085_s17, %s1643_s18  ;;  %p1649_p13 = scmp.lt.s32.totalorder %s1643_s18, %s1643_s18 }
  0x44   :  { %1257 = vmatpush3.msra.mxu0 %v145_v1  ;;  %v136_v11 = vld [vmem:[#allocation7 + $0x28] sm:$0xff]  ;;  %v135_v12 = vld [vmem:[#allocation7 + $0x20] sm:$0xff]  ;;  %v134_v13 = vld [vmem:[#allocation7 + $0x18] sm:$0xff] }
  0x45   :  { %1258 = vmatprep.subr.mxu0 %v144_v2  ;;  %v133_v14 = vld [vmem:[#allocation7 + $0x10] sm:$0xff]  ;;  %v132_v15 = vld [vmem:[#allocation7 + $0x8] sm:$0xff]  ;;  %v131_v16 = vld [vmem:[#allocation7] sm:$0xff]  ;;  %p1650_p0 = por %p1649_p13, %p1648_p12 }
  0x46   :  { %1259 = vmatpush3.msra.mxu0 %v144_v2  ;;  %v116_v17 = vld [vmem:[#allocation5 + $0x8] sm:$0xff]  ;;  %v117_v18 = vld [vmem:[#allocation5 + $0x10] sm:$0xff]  ;;  %v118_v19 = vld [vmem:[#allocation5 + $0x18] sm:$0xff] }
  0x47   :  { %1260 = vmatprep.subr.mxu0 %v143_v3  ;;  %v119_v20 = vld [vmem:[#allocation5 + $0x20] sm:$0xff]  ;;  %v120_v21 = vld [vmem:[#allocation5 + $0x28] sm:$0xff]  ;;  %v121_v22 = vld [vmem:[#allocation5 + $0x30] sm:$0xff]  ;;  %p1651_p1 = pnand %p1650_p0, %p1644_p11 }
  0x48   :  { %1261 = vmatpush3.msra.mxu0 %v143_v3  ;;  %v122_v23 = vld [vmem:[#allocation5 + $0x38] sm:$0xff]  ;;  %v123_v24 = vld [vmem:[#allocation5 + $0x40] sm:$0xff]  ;;  %v124_v25 = vld [vmem:[#allocation5 + $0x48] sm:$0xff] }
  0x49   :  { %1262 = vmatprep.subr.mxu0 %v142_v5  ;;  %v125_v26 = vld [vmem:[#allocation5 + $0x50] sm:$0xff]  ;;  %v126_v27 = vld [vmem:[#allocation5 + $0x58] sm:$0xff]  ;;  %v127_v28 = vld [vmem:[#allocation5 + $0x60] sm:$0xff] }
  0x4a   :  { %1263 = vmatpush3.msra.mxu0 %v142_v5  ;;  %v128_v29 = vld [vmem:[#allocation5 + $0x68] sm:$0xff]  ;;  %v129_v30 = vld [vmem:[#allocation5 + $0x70] sm:$0xff]  ;;  %v130_v31 = vld [vmem:[#allocation5 + $0x78] sm:$0xff] }
  0x4b   :  { %1264 = vmatprep.subr.mxu0 %v141_v6  ;;  %v1754_v32 = vld [vmem:[#allocation2] sm:$0xff]   ;;  %v523_v33 = vld [vmem:[#allocation7 + $0xf8] sm:$0xff]  ;;  %v522_v34 = vld [vmem:[#allocation7 + $0xf0] sm:$0xff] }
  0x4c   :  { %1265 = vmatpush3.msra.mxu0 %v141_v6  ;;  %1326 = vmatprep.mubr.bf16.mxu1 %v1754_v32  ;;  %v521_v35 = vld [vmem:[#allocation7 + $0xe8] sm:$0xff]  ;;  %v520_v36 = vld [vmem:[#allocation7 + $0xe0] sm:$0xff]  ;;  %v519_v37 = vld [vmem:[#allocation7 + $0xd8] sm:$0xff] }
  0x4d   :  { %1266 = vmatprep.subr.mxu0 %v140_v7  ;;  %v518_v38 = vld [vmem:[#allocation7 + $0xd0] sm:$0xff]  ;;  %v517_v39 = vld [vmem:[#allocation7 + $0xc8] sm:$0xff]  ;;  %v516_v40 = vld [vmem:[#allocation7 + $0xc0] sm:$0xff] }
  0x4e   :  { %1267 = vmatpush3.msra.mxu0 %v140_v7  ;;  %v515_v41 = vld [vmem:[#allocation7 + $0xb8] sm:$0xff]  ;;  %v514_v42 = vld [vmem:[#allocation7 + $0xb0] sm:$0xff]  ;;  %v1757_v3 = vld [vmem:[#allocation2 + $0x8] sm:$0xff]  }
  0x4f   :  { %1268 = vmatprep.subr.mxu0 %v139_v8  ;;  %v1759_v4 = vld [vmem:[#allocation2 + $0x10] sm:$0xff]   ;;  %v1763_v5 = vld [vmem:[#allocation2 + $0x18] sm:$0xff]   ;;  %v1765_v6 = vld [vmem:[#allocation2 + $0x20] sm:$0xff]  }
  0x50   :  { %1269 = vmatpush3.msra.mxu0 %v139_v8  ;;  %v1769_v7 = vld [vmem:[#allocation2 + $0x28] sm:$0xff]   ;;  %v1771_v8 = vld [vmem:[#allocation2 + $0x30] sm:$0xff]  }
  0x51   :  { %1270 = vmatprep.subr.mxu0 %v138_v9 }
  0x52   :  { %1271 = vmatpush3.msra.mxu0 %v138_v9  ;;  %v1775_v9 = vld [vmem:[#allocation2 + $0x38] sm:$0xff]  }
  0x53   :  { %1272 = vmatprep.subr.mxu0 %v137_v10 }
  0x54   :  { %1273 = vmatpush3.msra.mxu0 %v137_v10  ;;  %v513_v10 = vld [vmem:[#allocation7 + $0xa8] sm:$0xff] }
  0x55   :  { %1274 = vmatprep.subr.mxu0 %v136_v11 }
  0x56   :  { %1275 = vmatpush3.msra.mxu0 %v136_v11  ;;  %v512_v11 = vld [vmem:[#allocation7 + $0xa0] sm:$0xff] }
  0x57   :  { %1276 = vmatprep.subr.mxu0 %v135_v12 }
  0x58   :  { %1277 = vmatpush3.msra.mxu0 %v135_v12  ;;  %v511_v12 = vld [vmem:[#allocation7 + $0x98] sm:$0xff] }
  0x59   :  { %1278 = vmatprep.subr.mxu0 %v134_v13 }
  0x5a   :  { %1279 = vmatpush3.msra.mxu0 %v134_v13  ;;  %v510_v13 = vld [vmem:[#allocation7 + $0x90] sm:$0xff] }
  0x5b   :  { %1280 = vmatprep.subr.mxu0 %v133_v14 }
  0x5c   :  { %1281 = vmatpush3.msra.mxu0 %v133_v14  ;;  %v509_v14 = vld [vmem:[#allocation7 + $0x88] sm:$0xff] }
  0x5d   :  { %1282 = vmatprep.subr.mxu0 %v132_v15 }
  0x5e   :  { %1283 = vmatpush3.msra.mxu0 %v132_v15  ;;  %v508_v15 = vld [vmem:[#allocation7 + $0x80] sm:$0xff] }
  0x5f   :  { %1284 = vmatprep.subr.mxu0 %v131_v16 }
  0x60   :  { %1285 = vmatpush3.msra.mxu0 %v131_v16 }
  0x61   :  { %1287 = vmatmul.mubr.f32.vlgmr.msra.gmra.mxu0 %v116_v17  ;;  %1342 = vmatprep.subr.mxu0 %v523_v33  ;;  %v1782_v17 = vld [vmem:[%s1876_s3] ss:$0 sm:$0xff] }
  0x62   :  { %1289 = vmatprep.mubr.f32.mxu0 %v117_v18  ;;  %1343 = vmatpush3.msra.mxu0 %v523_v33 }
  0x63   :  { %1344 = vmatprep.subr.mxu0 %v522_v34 }
  0x64   :  { %1345 = vmatpush3.msra.mxu0 %v522_v34 }
  0x65   :  { %1290 = vmatmul.mubr.f32.gmra.mxu0 %v118_v19  ;;  %1346 = vmatprep.subr.mxu0 %v521_v35 }
  0x66   :  { %1292 = vmatprep.mubr.f32.mxu0 %v119_v20  ;;  %1347 = vmatpush3.msra.mxu0 %v521_v35 }
  0x67   :  { %1348 = vmatprep.subr.mxu0 %v520_v36 }
  0x68   :  { %1349 = vmatpush3.msra.mxu0 %v520_v36 }
  0x69   :  { %1293 = vmatmul.mubr.f32.gmra.mxu0 %v120_v21  ;;  %1350 = vmatprep.subr.mxu0 %v519_v37  ;;  %v1786_v21 = vld [vmem:[#allocation8] ss:$0 sm:$0xff] }
  0x6a   :  { %1295 = vmatprep.mubr.f32.mxu0 %v121_v22  ;;  %1351 = vmatpush3.msra.mxu0 %v519_v37 }
  0x6b   :  { %1352 = vmatprep.subr.mxu0 %v518_v38 }
  0x6c   :  { %1353 = vmatpush3.msra.mxu0 %v518_v38 }
  0x6d   :  { %1296 = vmatmul.mubr.f32.gmra.mxu0 %v122_v23  ;;  %1354 = vmatprep.subr.mxu0 %v517_v39 }
  0x6e   :  { %1298 = vmatprep.mubr.f32.mxu0 %v123_v24  ;;  %1355 = vmatpush3.msra.mxu0 %v517_v39 }
  0x6f   :  { %1356 = vmatprep.subr.mxu0 %v516_v40 }
  0x70   :  { %1357 = vmatpush3.msra.mxu0 %v516_v40 }
  0x71   :  { %1299 = vmatmul.mubr.f32.gmra.mxu0 %v124_v25  ;;  %1358 = vmatprep.subr.mxu0 %v515_v41 }
  0x72   :  { %1301 = vmatprep.mubr.f32.mxu0 %v125_v26  ;;  %1359 = vmatpush3.msra.mxu0 %v515_v41 }
  0x73   :  { %1360 = vmatprep.subr.mxu0 %v514_v42 }
  0x74   :  { %1361 = vmatpush3.msra.mxu0 %v514_v42 }
  0x75   :  { %1302 = vmatmul.mubr.f32.gmra.mxu0 %v126_v27  ;;  %1362 = vmatprep.subr.mxu0 %v513_v10 }
  0x76   :  { %1304 = vmatprep.mubr.f32.mxu0 %v127_v28  ;;  %1363 = vmatpush3.msra.mxu0 %v513_v10 }
  0x77   :  { %1364 = vmatprep.subr.mxu0 %v512_v11 }
  0x78   :  { %1365 = vmatpush3.msra.mxu0 %v512_v11 }
  0x79   :  { %1305 = vmatmul.mubr.f32.gmra.mxu0 %v128_v29  ;;  %1366 = vmatprep.subr.mxu0 %v511_v12 }
  0x7a   :  { %1307 = vmatprep.mubr.f32.mxu0 %v129_v30  ;;  %1367 = vmatpush3.msra.mxu0 %v511_v12 }
  0x7b   :  { %1368 = vmatprep.subr.mxu0 %v510_v13 }
  0x7c   :  { %1369 = vmatpush3.msra.mxu0 %v510_v13 }
  0x7d   :  { %1308 = vmatmul.mubr.f32.gmra.mxu0 %v130_v31  ;;  %1370 = vmatprep.subr.mxu0 %v509_v14 }
  0x7e   :  { %1371 = vmatpush3.msra.mxu0 %v509_v14 }
  0x7f   :  { %1372 = vmatprep.subr.mxu0 %v508_v15 }
  0x80   :  { %1373 = vmatpush3.msra.mxu0 %v508_v15 }
 0x121   :  { %v1288_v43 = vpop.f32.mrf.mxu0 }
 0x123   :  { %v213_v44 = vpop.f32.mrf.mxu0 }
 0x124   :  { %v292_v2 = vpack.c.bf16 %v1288_v43, %v213_v44 }
 0x125   :  { %v1291_v45 = vpop.f32.mrf.mxu0 }
 0x127   :  { %v223_v46 = vpop.f32.mrf.mxu0 }
 0x128   :  { %v293_v1 = vpack.c.bf16 %v1291_v45, %v223_v46 }
 0x129   :  { %v1294_v47 = vpop.f32.mrf.mxu0 }
 0x12b   :  { %v233_v48 = vpop.f32.mrf.mxu0 }
 0x12c   :  { %v294_v0 = vpack.c.bf16 %v1294_v47, %v233_v48 }
 0x12d   :  { %v1297_v49 = vpop.f32.mrf.mxu0 }
 0x12f   :  { %v243_v50 = vpop.f32.mrf.mxu0 }
 0x130   :  { %v295_v63 = vpack.c.bf16 %v1297_v49, %v243_v50 }
 0x131   :  { %v1300_v51 = vpop.f32.mrf.mxu0 }
 0x133   :  { %v253_v52 = vpop.f32.mrf.mxu0 }
 0x134   :  { %v296_v62 = vpack.c.bf16 %v1300_v51, %v253_v52 }
 0x135   :  { %v1303_v53 = vpop.f32.mrf.mxu0 }
 0x137   :  { %v263_v54 = vpop.f32.mrf.mxu0 }
 0x138   :  { %v297_v61 = vpack.c.bf16 %v1303_v53, %v263_v54 }
 0x139   :  { %v1306_v55 = vpop.f32.mrf.mxu0 }
 0x13b   :  { %v273_v56 = vpop.f32.mrf.mxu0 }
 0x13c   :  { %v298_v60 = vpack.c.bf16 %v1306_v55, %v273_v56 }
 0x13d   :  { %v1309_v57 = vpop.f32.mrf.mxu0 }
 0x13f   :  { %v283_v58 = vpop.f32.mrf.mxu0 }
 0x140   :  { %v299_v59 = vpack.c.bf16 %v1309_v57, %v283_v58 }
 0x142   :  { %1310 = vmatprep.subr.bf16.mxu1 %v299_v59 }
 0x143   :  { %1311 = vmatpush3.bf16.msra.mxu1 %v299_v59 }
 0x144   :  { %1312 = vmatprep.subr.bf16.mxu1 %v298_v60 }
 0x147   :  { %1313 = vmatpush3.bf16.msra.mxu1 %v298_v60 }
 0x148   :  { %1314 = vmatprep.subr.bf16.mxu1 %v297_v61 }
 0x14b   :  { %1315 = vmatpush3.bf16.msra.mxu1 %v297_v61 }
 0x14c   :  { %1316 = vmatprep.subr.bf16.mxu1 %v296_v62 }
 0x14f   :  { %1317 = vmatpush3.bf16.msra.mxu1 %v296_v62 }
 0x150   :  { %1318 = vmatprep.subr.bf16.mxu1 %v295_v63 }
 0x153   :  { %1319 = vmatpush3.bf16.msra.mxu1 %v295_v63 }
 0x154   :  { %1320 = vmatprep.subr.bf16.mxu1 %v294_v0 }
 0x157   :  { %1321 = vmatpush3.bf16.msra.mxu1 %v294_v0 }
 0x158   :  { %1322 = vmatprep.subr.bf16.mxu1 %v293_v1 }
 0x15b   :  { %1323 = vmatpush3.bf16.msra.mxu1 %v293_v1 }
 0x15c   :  { %1324 = vmatprep.subr.bf16.mxu1 %v292_v2 }
 0x15f   :  { %1325 = vmatpush3.bf16.msra.mxu1 %v292_v2 }
 0x162   :  { %1327 = vmatmul.mubr.bf16.vlgmr.msra.gmra.mxu1 %v1757_v3 }
 0x163   :  { %1330 = vmatprep.mubr.bf16.mxu1 %v1759_v4 }
 0x16a   :  { %1331 = vmatmul.mubr.bf16.gmra.mxu1 %v1763_v5 }
 0x16b   :  { %1334 = vmatprep.mubr.bf16.mxu1 %v1765_v6 }
 0x172   :  { %1335 = vmatmul.mubr.bf16.gmra.mxu1 %v1769_v7 }
 0x173   :  { %1338 = vmatprep.mubr.bf16.mxu1 %v1771_v8 }
 0x17a   :  { %1339 = vmatmul.mubr.bf16.gmra.mxu1 %v1775_v9 }
 0x17b   :  { %1414 = vmatprep.mubr.bf16.mxu1 %v1754_v32 }
 0x222   :  { %v1328_v16 = vpop.f32.mrf.mxu1 }
 0x223   :  { %v454_v20 = vmul.f32 %v1328_v16, %v1782_v17 }
 0x224   :  { %v382_v18 = vpop.f32.mrf.mxu1 }
 0x225   :  { %v452_v19 = vmul.f32 %v1782_v17, %v382_v18  ;;  %v477_v28 = vadd.f32 %v1786_v21, %v454_v20 }
 0x226   :  { %v1329_v22 = vpop.f32.mrf.mxu1 }
 0x227   :  { %v475_v23 = vadd.f32 %v1786_v21, %v452_v19  ;;  %v455_v26 = vmul.f32 %v1329_v22, %v1782_v17  ;;  %v493_v35 = vmax.f32 %v477_v28, 0.0  ;;  %v852_v28 = vld [vmem:[#allocation10 + $0x70] sm:$0xff] }
 0x228   :  { %v385_v24 = vpop.f32.mrf.mxu1 }
 0x229   :  { %v491_v25 = vmax.f32 %v475_v23, 0.0  ;;  %v453_v27 = vmul.f32 %v1782_v17, %v385_v24  ;;  %v478_v32 = vadd.f32 %v1786_v21, %v455_v26 }
 0x22a   :  { %v1332_v29 = vpop.f32.mrf.mxu1 }
 0x22b   :  { %v476_v30 = vadd.f32 %v1786_v21, %v453_v27  ;;  %1374 = vmatprep.mubr.f32.mxu0 %v491_v25  ;;  %v458_v36 = vmul.f32 %v1332_v29, %v1782_v17  ;;  %v494_v40 = vmax.f32 %v478_v32, 0.0  ;;  %v853_v27 = vld [vmem:[#allocation10 + $0x78] sm:$0xff]  ;;  %v851_v29 = vld [vmem:[#allocation10 + $0x68] sm:$0xff]  ;;  %v846_v32 = vld [vmem:[#allocation10 + $0x40] sm:$0xff] }
 0x22c   :  { %v398_v31 = vpop.f32.mrf.mxu1  ;;  %1430 = vmatprep.subr.mxu0 %v853_v27 }
 0x22d   :  { %v492_v33 = vmax.f32 %v476_v30, 0.0  ;;  %v456_v34 = vmul.f32 %v1782_v17, %v398_v31  ;;  %v481_v44 = vadd.f32 %v1786_v21, %v458_v36  ;;  %v849_v30 = vld [vmem:[#allocation10 + $0x58] sm:$0xff]  ;;  %v847_v31 = vld [vmem:[#allocation10 + $0x48] sm:$0xff] }
 0x22e   :  { %v1333_v37 = vpop.f32.mrf.mxu1 }
 0x22f   :  { %v479_v38 = vadd.f32 %v1786_v21, %v456_v34  ;;  %1375 = vmatmul.mubr.f32.vlgmr.msra.gmra.mxu0 %v492_v33  ;;  %v459_v42 = vmul.f32 %v1333_v37, %v1782_v17  ;;  %v497_v51 = vmax.f32 %v481_v44, 0.0  ;;  %v845_v33 = vld [vmem:[#allocation10 + $0x38] sm:$0xff]  ;;  %v844_v34 = vld [vmem:[#allocation10 + $0x30] sm:$0xff] }
 0x230   :  { %v401_v39 = vpop.f32.mrf.mxu1  ;;  %1377 = vmatprep.mubr.f32.mxu0 %v493_v35  ;;  %1431 = vmatpush3.msra.mxu0 %v853_v27 }
 0x231   :  { %v495_v41 = vmax.f32 %v479_v38, 0.0  ;;  %v457_v43 = vmul.f32 %v1782_v17, %v401_v39  ;;  %v482_v48 = vadd.f32 %v1786_v21, %v459_v42  ;;  %1432 = vmatprep.subr.mxu0 %v852_v28 }
 0x232   :  { %v1336_v45 = vpop.f32.mrf.mxu1  ;;  %1433 = vmatpush3.msra.mxu0 %v852_v28 }
 0x233   :  { %v480_v46 = vadd.f32 %v1786_v21, %v457_v43  ;;  %1378 = vmatmul.mubr.f32.gmra.mxu0 %v494_v40  ;;  %v462_v52 = vmul.f32 %v1336_v45, %v1782_v17  ;;  %v498_v56 = vmax.f32 %v482_v48, 0.0  ;;  %1434 = vmatprep.subr.mxu0 %v851_v29 }
 0x234   :  { %v414_v47 = vpop.f32.mrf.mxu1  ;;  %1380 = vmatprep.mubr.f32.mxu0 %v495_v41  ;;  %1435 = vmatpush3.msra.mxu0 %v851_v29 }
 0x235   :  { %v496_v49 = vmax.f32 %v480_v46, 0.0  ;;  %v460_v50 = vmul.f32 %v1782_v17, %v414_v47  ;;  %v485_v60 = vadd.f32 %v1786_v21, %v462_v52 }
 0x236   :  { %v1337_v53 = vpop.f32.mrf.mxu1 }
 0x237   :  { %v483_v54 = vadd.f32 %v1786_v21, %v460_v50  ;;  %1381 = vmatmul.mubr.f32.gmra.mxu0 %v496_v49  ;;  %v463_v58 = vmul.f32 %v1337_v53, %v1782_v17  ;;  %v501_v10 = vmax.f32 %v485_v60, 0.0  ;;  %v842_v60 = vld [vmem:[#allocation10 + $0x20] sm:$0xff] }
 0x238   :  { %v417_v55 = vpop.f32.mrf.mxu1  ;;  %1383 = vmatprep.mubr.f32.mxu0 %v497_v51 }
 0x239   :  { %v499_v57 = vmax.f32 %v483_v54, 0.0  ;;  %v461_v59 = vmul.f32 %v1782_v17, %v417_v55  ;;  %v486_v0 = vadd.f32 %v1786_v21, %v463_v58 }
 0x23a   :  { %v1340_v61 = vpop.f32.mrf.mxu1 }
 0x23b   :  { %v484_v62 = vadd.f32 %v1786_v21, %v461_v59  ;;  %1384 = vmatmul.mubr.f32.gmra.mxu0 %v498_v56  ;;  %v466_v11 = vmul.f32 %v1340_v61, %v1782_v17  ;;  %v502_v15 = vmax.f32 %v486_v0, 0.0  ;;  %v843_v59 = vld [vmem:[#allocation10 + $0x28] sm:$0xff]  ;;  %v841_v61 = vld [vmem:[#allocation10 + $0x18] sm:$0xff] }
 0x23c   :  { %v430_v63 = vpop.f32.mrf.mxu1  ;;  %1386 = vmatprep.mubr.f32.mxu0 %v499_v57 }
 0x23d   :  { %v500_v1 = vmax.f32 %v484_v62, 0.0  ;;  %v464_v2 = vmul.f32 %v1782_v17, %v430_v63  ;;  %v489_v20 = vadd.f32 %v1786_v21, %v466_v11  ;;  %v1832_v63 = vld [vmem:[#allocation8 + $0x1] ss:$0 sm:$0xff] }
 0x23e   :  { %v1341_v12 = vpop.f32.mrf.mxu1 }
 0x23f   :  { %v487_v13 = vadd.f32 %v1786_v21, %v464_v2  ;;  %1387 = vmatmul.mubr.f32.gmra.mxu0 %v500_v1  ;;  %v467_v18 = vmul.f32 %v1341_v12, %v1782_v17  ;;  %v505_v25 = vmax.f32 %v489_v20, 0.0 }
 0x240   :  { %v433_v14 = vpop.f32.mrf.mxu1  ;;  %1389 = vmatprep.mubr.f32.mxu0 %v501_v10 }
 0x241   :  { %v503_v16 = vmax.f32 %v487_v13, 0.0  ;;  %v465_v19 = vmul.f32 %v1782_v17, %v433_v14  ;;  %v490_v23 = vadd.f32 %v1786_v21, %v467_v18  ;;  %v850_v17 = vld [vmem:[#allocation10 + $0x60] sm:$0xff] }
 0x242   :  { %1436 = vmatprep.subr.mxu0 %v850_v17 }
 0x243   :  { %v488_v22 = vadd.f32 %v1786_v21, %v465_v19  ;;  %1390 = vmatmul.mubr.f32.gmra.mxu0 %v502_v15  ;;  %v506_v26 = vmax.f32 %v490_v23, 0.0  ;;  %v848_v21 = vld [vmem:[#allocation10 + $0x50] sm:$0xff] }
 0x244   :  { %1392 = vmatprep.mubr.f32.mxu0 %v503_v16  ;;  %1437 = vmatpush3.msra.mxu0 %v850_v17 }
 0x245   :  { %v504_v24 = vmax.f32 %v488_v22, 0.0  ;;  %1438 = vmatprep.subr.mxu0 %v849_v30 }
 0x246   :  { %1439 = vmatpush3.msra.mxu0 %v849_v30 }
 0x247   :  { %1393 = vmatmul.mubr.f32.gmra.mxu0 %v504_v24  ;;  %1440 = vmatprep.subr.mxu0 %v848_v21 }
 0x248   :  { %1395 = vmatprep.mubr.f32.mxu0 %v505_v25  ;;  %1441 = vmatpush3.msra.mxu0 %v848_v21 }
 0x249   :  { %1442 = vmatprep.subr.mxu0 %v847_v31 }
 0x24a   :  { %1443 = vmatpush3.msra.mxu0 %v847_v31 }
 0x24b   :  { %1396 = vmatmul.mubr.f32.gmra.mxu0 %v506_v26  ;;  %1444 = vmatprep.subr.mxu0 %v846_v32 }
 0x24c   :  { %1445 = vmatpush3.msra.mxu0 %v846_v32 }
 0x24d   :  { %1446 = vmatprep.subr.mxu0 %v845_v33 }
 0x24e   :  { %1447 = vmatpush3.msra.mxu0 %v845_v33 }
 0x24f   :  { %1448 = vmatprep.subr.mxu0 %v844_v34 }
 0x250   :  { %1449 = vmatpush3.msra.mxu0 %v844_v34 }
 0x251   :  { %1450 = vmatprep.subr.mxu0 %v843_v59 }
 0x252   :  { %1451 = vmatpush3.msra.mxu0 %v843_v59 }
 0x253   :  { %1452 = vmatprep.subr.mxu0 %v842_v60 }
 0x254   :  { %1453 = vmatpush3.msra.mxu0 %v842_v60 }
 0x255   :  { %1454 = vmatprep.subr.mxu0 %v841_v61 }
 0x256   :  { %1455 = vmatpush3.msra.mxu0 %v841_v61 }
 0x2ef   :  { %v1376_v35 = vpop.f32.mrf.mxu0 }
 0x2f1   :  { %v590_v36 = vpop.f32.mrf.mxu0 }
 0x2f2   :  { %v669_v58 = vpack.c.bf16 %v1376_v35, %v590_v36 }
 0x2f3   :  { %v1379_v37 = vpop.f32.mrf.mxu0 }
 0x2f5   :  { %v600_v38 = vpop.f32.mrf.mxu0 }
 0x2f6   :  { %v670_v57 = vpack.c.bf16 %v1379_v37, %v600_v38 }
 0x2f7   :  { %v1382_v39 = vpop.f32.mrf.mxu0 }
 0x2f9   :  { %v610_v40 = vpop.f32.mrf.mxu0 }
 0x2fa   :  { %v671_v56 = vpack.c.bf16 %v1382_v39, %v610_v40 }
 0x2fb   :  { %v1385_v41 = vpop.f32.mrf.mxu0 }
 0x2fd   :  { %v620_v42 = vpop.f32.mrf.mxu0 }
 0x2fe   :  { %v672_v55 = vpack.c.bf16 %v1385_v41, %v620_v42 }
 0x2ff   :  { %v1388_v43 = vpop.f32.mrf.mxu0 }
 0x301   :  { %v630_v44 = vpop.f32.mrf.mxu0 }
 0x302   :  { %v673_v54 = vpack.c.bf16 %v1388_v43, %v630_v44 }
 0x303   :  { %v1391_v45 = vpop.f32.mrf.mxu0 }
 0x305   :  { %v640_v46 = vpop.f32.mrf.mxu0 }
 0x306   :  { %v674_v53 = vpack.c.bf16 %v1391_v45, %v640_v46 }
 0x307   :  { %v1394_v47 = vpop.f32.mrf.mxu0 }
 0x309   :  { %v650_v48 = vpop.f32.mrf.mxu0 }
 0x30a   :  { %v675_v52 = vpack.c.bf16 %v1394_v47, %v650_v48 }
 0x30b   :  { %v1397_v49 = vpop.f32.mrf.mxu0 }
 0x30d   :  { %v660_v50 = vpop.f32.mrf.mxu0 }
 0x30e   :  { %v676_v51 = vpack.c.bf16 %v1397_v49, %v660_v50 }
 0x310   :  { %1398 = vmatprep.subr.bf16.mxu1 %v676_v51 }
 0x311   :  { %1399 = vmatpush3.bf16.msra.mxu1 %v676_v51 }
 0x312   :  { %1400 = vmatprep.subr.bf16.mxu1 %v675_v52 }
 0x315   :  { %1401 = vmatpush3.bf16.msra.mxu1 %v675_v52 }
 0x316   :  { %1402 = vmatprep.subr.bf16.mxu1 %v674_v53 }
 0x319   :  { %1403 = vmatpush3.bf16.msra.mxu1 %v674_v53 }
 0x31a   :  { %1404 = vmatprep.subr.bf16.mxu1 %v673_v54 }
 0x31d   :  { %1405 = vmatpush3.bf16.msra.mxu1 %v673_v54 }
 0x31e   :  { %1406 = vmatprep.subr.bf16.mxu1 %v672_v55 }
 0x321   :  { %1407 = vmatpush3.bf16.msra.mxu1 %v672_v55 }
 0x322   :  { %1408 = vmatprep.subr.bf16.mxu1 %v671_v56 }
 0x325   :  { %1409 = vmatpush3.bf16.msra.mxu1 %v671_v56 }
 0x326   :  { %1410 = vmatprep.subr.bf16.mxu1 %v670_v57 }
 0x329   :  { %1411 = vmatpush3.bf16.msra.mxu1 %v670_v57 }
 0x32a   :  { %1412 = vmatprep.subr.bf16.mxu1 %v669_v58 }
 0x32d   :  { %1413 = vmatpush3.bf16.msra.mxu1 %v669_v58 }
 0x330   :  { %1415 = vmatmul.mubr.bf16.vlgmr.msra.gmra.mxu1 %v1757_v3  ;;  %v840_v3 = vld [vmem:[#allocation10 + $0x10] sm:$0xff] }
 0x331   :  { %1418 = vmatprep.mubr.bf16.mxu1 %v1759_v4  ;;  %1456 = vmatprep.subr.mxu0 %v840_v3  ;;  %v839_v4 = vld [vmem:[#allocation10 + $0x8] sm:$0xff] }
 0x332   :  { %1457 = vmatpush3.msra.mxu0 %v840_v3 }
 0x333   :  { %1458 = vmatprep.subr.mxu0 %v839_v4 }
 0x334   :  { %1459 = vmatpush3.msra.mxu0 %v839_v4 }
 0x338   :  { %1419 = vmatmul.mubr.bf16.gmra.mxu1 %v1763_v5  ;;  %v838_v5 = vld [vmem:[#allocation10] sm:$0xff] }
 0x339   :  { %1422 = vmatprep.mubr.bf16.mxu1 %v1765_v6  ;;  %1460 = vmatprep.subr.mxu0 %v838_v5 }
 0x33a   :  { %1461 = vmatpush3.msra.mxu0 %v838_v5 }
 0x340   :  { %1423 = vmatmul.mubr.bf16.gmra.mxu1 %v1769_v7  ;;  %v1828_v7 = vld [vmem:[%s1876_s3 + $0x1] ss:$0 sm:$0xff] }
 0x341   :  { %1426 = vmatprep.mubr.bf16.mxu1 %v1771_v8 }
 0x348   :  { %1427 = vmatmul.mubr.bf16.gmra.mxu1 %v1775_v9 }
 0x3f0   :  { %v1416_v6 = vpop.f32.mrf.mxu1 }
 0x3f1   :  { %v784_v62 = vmul.f32 %v1416_v6, %v1828_v7 }
 0x3f2   :  { %v711_v8 = vpop.f32.mrf.mxu1 }
 0x3f3   :  { %v782_v9 = vmul.f32 %v1828_v7, %v711_v8  ;;  %v808_v13 = vadd.f32 %v1832_v63, %v784_v62 }
 0x3f4   :  { %v1417_v0 = vpop.f32.mrf.mxu1 }
 0x3f5   :  { %v806_v1 = vadd.f32 %v1832_v63, %v782_v9  ;;  %v785_v11 = vmul.f32 %v1417_v0, %v1828_v7  ;;  %v824_v22 = vmax.f32 %v808_v13, 0.0  ;;  %v1682_v9 = vmov 0.0  }
 0x3f6   :  { %v714_v2 = vpop.f32.mrf.mxu1  ;;  %1486 = vmatprep.subr.mxu1 %v1682_v9  ;;  %1518 = vmatprep.mubr.msk.f32.mxu1 %vm1683_vm0, %v1682_v9 }
 0x3f7   :  { %v822_v10 = vmax.f32 %v806_v1, 0.0  ;;  %v783_v12 = vmul.f32 %v1828_v7, %v714_v2  ;;  %v809_v18 = vadd.f32 %v1832_v63, %v785_v11 }
 0x3f8   :  { %v1420_v14 = vpop.f32.mrf.mxu1 }
 0x3f9   :  { %v807_v15 = vadd.f32 %v1832_v63, %v783_v12  ;;  %1462 = vmatprep.mubr.f32.mxu0 %v822_v10  ;;  %v788_v23 = vmul.f32 %v1420_v14, %v1828_v7  ;;  %v825_v27 = vmax.f32 %v809_v18, 0.0 }
 0x3fa   :  { %v727_v16 = vpop.f32.mrf.mxu1 }
 0x3fb   :  { %v823_v19 = vmax.f32 %v807_v15, 0.0  ;;  %v786_v20 = vmul.f32 %v1828_v7, %v727_v16  ;;  %v812_v30 = vadd.f32 %v1832_v63, %v788_v23  ;;  %v1108_v23 = vld [vmem:[%s1880_s7] ss:$0 sm:$0xff] }
 0x3fc   :  { %v1421_v24 = vpop.f32.mrf.mxu1 }
 0x3fd   :  { %v810_v25 = vadd.f32 %v1832_v63, %v786_v20  ;;  %1463 = vmatmul.mubr.f32.vlgmr.msra.gmra.mxu0 %v823_v19  ;;  %v789_v29 = vmul.f32 %v1421_v24, %v1828_v7  ;;  %v828_v36 = vmax.f32 %v812_v30, 0.0 }
 0x3fe   :  { %v730_v26 = vpop.f32.mrf.mxu1  ;;  %1465 = vmatprep.mubr.f32.mxu0 %v824_v22  ;;  %v999_v22 = vld [vmem:[%s1879_s6] sm:$0xff] }
 0x3ff   :  { %v826_v28 = vmax.f32 %v810_v25, 0.0  ;;  %v787_v17 = vmul.f32 %v1828_v7, %v730_v26  ;;  %v813_v33 = vadd.f32 %v1832_v63, %v789_v29 }
 0x400   :  { %v1424_v21 = vpop.f32.mrf.mxu1 }
 0x401   :  { %v811_v31 = vadd.f32 %v1832_v63, %v787_v17  ;;  %1466 = vmatmul.mubr.f32.gmra.mxu0 %v825_v27  ;;  %v792_v37 = vmul.f32 %v1424_v21, %v1828_v7  ;;  %v829_v41 = vmax.f32 %v813_v33, 0.0 }
 0x402   :  { %v743_v32 = vpop.f32.mrf.mxu1  ;;  %1468 = vmatprep.mubr.f32.mxu0 %v826_v28 }
 0x403   :  { %v827_v34 = vmax.f32 %v811_v31, 0.0  ;;  %v790_v35 = vmul.f32 %v1828_v7, %v743_v32  ;;  %v816_v45 = vadd.f32 %v1832_v63, %v792_v37 }
 0x404   :  { %v1425_v38 = vpop.f32.mrf.mxu1 }
 0x405   :  { %v814_v39 = vadd.f32 %v1832_v63, %v790_v35  ;;  %1469 = vmatmul.mubr.f32.gmra.mxu0 %v827_v34  ;;  %v793_v43 = vmul.f32 %v1425_v38, %v1828_v7  ;;  %v832_v52 = vmax.f32 %v816_v45, 0.0 }
 0x406   :  { %v746_v40 = vpop.f32.mrf.mxu1  ;;  %1471 = vmatprep.mubr.f32.mxu0 %v828_v36 }
 0x407   :  { %v830_v42 = vmax.f32 %v814_v39, 0.0  ;;  %v791_v44 = vmul.f32 %v1828_v7, %v746_v40  ;;  %v817_v49 = vadd.f32 %v1832_v63, %v793_v43 }
 0x408   :  { %v1428_v46 = vpop.f32.mrf.mxu1 }
 0x409   :  { %v815_v47 = vadd.f32 %v1832_v63, %v791_v44  ;;  %1472 = vmatmul.mubr.f32.gmra.mxu0 %v829_v41  ;;  %v796_v53 = vmul.f32 %v1428_v46, %v1828_v7  ;;  %v833_v57 = vmax.f32 %v817_v49, 0.0 }
 0x40a   :  { %v759_v48 = vpop.f32.mrf.mxu1  ;;  %1474 = vmatprep.mubr.f32.mxu0 %v830_v42 }
 0x40b   :  { %v831_v50 = vmax.f32 %v815_v47, 0.0  ;;  %v794_v51 = vmul.f32 %v1828_v7, %v759_v48  ;;  %v820_v61 = vadd.f32 %v1832_v63, %v796_v53 }
 0x40c   :  { %v1429_v54 = vpop.f32.mrf.mxu1 }
 0x40d   :  { %v818_v55 = vadd.f32 %v1832_v63, %v794_v51  ;;  %1475 = vmatmul.mubr.f32.gmra.mxu0 %v831_v50  ;;  %v797_v59 = vmul.f32 %v1429_v54, %v1828_v7  ;;  %v836_v6 = vmax.f32 %v820_v61, 0.0 }
 0x40e   :  { %v762_v56 = vpop.f32.mrf.mxu1  ;;  %1477 = vmatprep.mubr.f32.mxu0 %v832_v52 }
 0x40f   :  { %v834_v58 = vmax.f32 %v818_v55, 0.0  ;;  %v795_v60 = vmul.f32 %v1828_v7, %v762_v56  ;;  %v821_v4 = vadd.f32 %v1832_v63, %v797_v59 }
 0x411   :  { %v819_v3 = vadd.f32 %v1832_v63, %v795_v60  ;;  %1478 = vmatmul.mubr.f32.gmra.mxu0 %v833_v57  ;;  %v837_v8 = vmax.f32 %v821_v4, 0.0 }
 0x412   :  { %1480 = vmatprep.mubr.f32.mxu0 %v834_v58 }
 0x413   :  { %v835_v5 = vmax.f32 %v819_v3, 0.0 }
 0x415   :  { %1481 = vmatmul.mubr.f32.gmra.mxu0 %v835_v5 }
 0x416   :  { %1483 = vmatprep.mubr.f32.mxu0 %v836_v6 }
 0x419   :  { %1484 = vmatmul.mubr.f32.gmra.mxu0 %v837_v8 }
 0x4bd   :  { %v1464_v62 = vpop.f32.mrf.mxu0 }
 0x4bf   :  { %v920_v7 = vpop.f32.mrf.mxu0 }
 0x4c1   :  { %v1467_v0 = vpop.f32.mrf.mxu0 }
 0x4c3   :  { %v930_v1 = vpop.f32.mrf.mxu0 }
 0x4c5   :  { %v1470_v2 = vpop.f32.mrf.mxu0 }
 0x4c7   :  { %v940_v10 = vpop.f32.mrf.mxu0 }
 0x4c9   :  { %v1473_v11 = vpop.f32.mrf.mxu0 }
 0x4cb   :  { %v950_v12 = vpop.f32.mrf.mxu0 }
 0x4cd   :  { %v1476_v13 = vpop.f32.mrf.mxu0 }
 0x4cf   :  { %v960_v63 = vpop.f32.mrf.mxu0 }
 0x4d1   :  { %v1479_v14 = vpop.f32.mrf.mxu0 }
 0x4d3   :  { %v970_v15 = vpop.f32.mrf.mxu0 }
 0x4d5   :  { %v1482_v16 = vpop.f32.mrf.mxu0 }
 0x4d7   :  { %v980_v18 = vpop.f32.mrf.mxu0 }
 0x4d9   :  { %v1485_v19 = vpop.f32.mrf.mxu0 }
 0x4da   :  { %1487 = vmatpush3.msra.mxu1 %v1485_v19 }
 0x4db   :  { %v990_v20 = vpop.f32.mrf.mxu0  ;;  %1488 = vmatprep.subr.mxu1 %v1682_v9 }
 0x4dc   :  { %1489 = vmatpush3.msra.mxu1 %v990_v20 }
 0x4dd   :  { %1490 = vmatprep.subr.mxu1 %v1682_v9 }
 0x4de   :  { %1491 = vmatpush3.msra.mxu1 %v1482_v16 }
 0x4df   :  { %1492 = vmatprep.subr.mxu1 %v1682_v9 }
 0x4e0   :  { %1493 = vmatpush3.msra.mxu1 %v980_v18 }
 0x4e1   :  { %1494 = vmatprep.subr.mxu1 %v1682_v9 }
 0x4e2   :  { %1495 = vmatpush3.msra.mxu1 %v1479_v14 }
 0x4e3   :  { %1496 = vmatprep.subr.mxu1 %v1682_v9 }
 0x4e4   :  { %1497 = vmatpush3.msra.mxu1 %v970_v15 }
 0x4e5   :  { %1498 = vmatprep.subr.mxu1 %v1682_v9 }
 0x4e6   :  { %1499 = vmatpush3.msra.mxu1 %v1476_v13 }
 0x4e7   :  { %1500 = vmatprep.subr.mxu1 %v1682_v9 }
 0x4e8   :  { %1501 = vmatpush3.msra.mxu1 %v960_v63 }
 0x4e9   :  { %1502 = vmatprep.subr.mxu1 %v1682_v9 }
 0x4ea   :  { %1503 = vmatpush3.msra.mxu1 %v1473_v11 }
 0x4eb   :  { %1504 = vmatprep.subr.mxu1 %v1682_v9 }
 0x4ec   :  { %1505 = vmatpush3.msra.mxu1 %v950_v12 }
 0x4ed   :  { %1506 = vmatprep.subr.mxu1 %v1682_v9 }
 0x4ee   :  { %1507 = vmatpush3.msra.mxu1 %v1470_v2 }
 0x4ef   :  { %1508 = vmatprep.subr.mxu1 %v1682_v9 }
 0x4f0   :  { %1509 = vmatpush3.msra.mxu1 %v940_v10 }
 0x4f1   :  { %1510 = vmatprep.subr.mxu1 %v1682_v9 }
 0x4f2   :  { %1511 = vmatpush3.msra.mxu1 %v1467_v0 }
 0x4f3   :  { %1512 = vmatprep.subr.mxu1 %v1682_v9 }
 0x4f4   :  { %1513 = vmatpush3.msra.mxu1 %v930_v1 }
 0x4f5   :  { %1514 = vmatprep.subr.mxu1 %v1682_v9 }
 0x4f6   :  { %1515 = vmatpush3.msra.mxu1 %v1464_v62 }
 0x4f7   :  { %1516 = vmatprep.subr.mxu1 %v1682_v9 }
 0x4f8   :  { %1517 = vmatpush3.msra.mxu1 %v920_v7 }
 0x4f9   :  { %1519 = vmatmul.mubr.f32.vlgmr.msra.gmra.mxu1 %v999_v22 }
 0x5b9   :  { %v1073_v24 = vpop.f32.mrf.mxu1 }
 0x5ba   :  { %v1074_v25 = vadd.f32 %v1108_v23, %v1073_v24 }
 0x5bb   :  { %v1520_v26 = vpop.f32.mrf.mxu1 }
 0x5bc   :  { %1077 = vst [vmem:[#allocation11] sm:$0xff] %v1074_v25 }
 0x5bd   :  { %1654 = shalt.err (!%p1651_p1)
}
 0x5be   :  { %1087 = dma.vmem_to_hbm [thread:$0]  %s1085_s17, 128, %s1881_s8, [#allocation4]  }
 0x5bf   :  { %1669 = dma.done.wait [#allocation4], 128  }
 0x5c0   :  { %1670 = vsyncadd [#allocation4], 4294967168 }
 0x5c1   :  { %1091 = vsyncpa [#allocation3], 1 }
 0x5c2   :  { %1092 = vsyncpa [#allocation6], 1 }
 0x5c3   :  { %1093 = vsyncpa [#allocation9], 1 }
 0x5c4   :  { %1094 = vsyncpa [#allocation4], 1 }

</bundles_post_ra>
